<compile_context>
chip_gen: v5e
topology: v5e:2x2
jax: 0.10.0
libtpu: 0.0.40
codegen_flags: <defaults>
</compile_context>

<pallas_src>
import functools
import numpy as np
import jax
import jax.numpy as jnp
from jax.experimental import pallas as pl
from jax.experimental.pallas import tpu as pltpu

_EPS = 1e-6   # nn.LayerNorm(..., eps=1e-06) in the PyTorch module


# ------------------------------- kernel ------------------------------------ #

def ssm_kernel(x_ref, wbig_ref, bc_ref, rec_ref, cst_ref, out_ref, *, L, S, D):
    f32 = jnp.float32
    LD = L * D
    LS = L * S
    TB = x_ref.shape[0]

    x = x_ref[...]                                                   # (TB, LD)
    # 128-lane-aligned concat: [x | x*x]  -> one K=2*LD MXU matmul gives
    # per-row sums, sums of squares, and all three pre-activation dots.
    lhs = jnp.concatenate([x, x * x], axis=-1)                       # (TB, 2*LD)
    big = jnp.dot(lhs, wbig_ref[...], preferred_element_type=f32)    # (TB, 2L+LS+S+L)

    o = 0
    s1 = big[:, o:o + L]; o += L            # sum_d x[b, l, d]
    t1 = big[:, o:o + L]; o += L            # x_row . (g1 * w_1)
    tc = big[:, o:o + LS]; o += LS          # x_row @ (g_c[:,None] * w_c_1)
    xwa = big[:, o:o + S]; o += S           # x_flat @ (g2[:,None] * w_a_1)
    qsum = big[:, o:o + L]                  # sum_d x[b, l, d]^2

    # packed constants (one (8,128) buffer)
    bcf = cst_ref[0:1, 0:LS]                # (1, LS)
    cswag = cst_ref[1:2, 0:S]               # (1, S)
    baf = cst_ref[2:3, 0:S]                 # (1, S)
    sv1 = cst_ref[3:4, 0:L]                 # scalar, replicated across L lanes
    b1f = cst_ref[4:5, 0:L]

    # ---- per-row LayerNorm stats, shared by layer_norm and layer_c ---------
    # NOTE: one-pass E[x^2]-E[x]^2 (f32); clamped at 0 to avoid tiny negative
    # variance.  Assumes roughly zero-mean inputs (same tolerance as before).
    inv_d = 1.0 / D
    mu = s1 * inv_d                                                  # (TB, L)
    var = jnp.maximum(qsum * inv_d - mu * mu, 0.0)
    rstd = jax.lax.rsqrt(var + _EPS)

    # ---- Sigma = softplus(w_1(layer_norm(x))) ------------------------------
    pre_sig = rstd * (t1 - mu * sv1) + b1f                           # (TB, L)
    sigma = jnp.maximum(pre_sig, 0.0) + jnp.log1p(jnp.exp(-jnp.abs(pre_sig)))

    # ---- flattened LayerNorm stats (layer_norm2 over all L*D features) -----
    inv_ld = 1.0 / LD
    mu_f = jnp.sum(s1, axis=-1, keepdims=True) * inv_ld              # (TB, 1)
    var_f = jnp.maximum(
        jnp.sum(qsum, axis=-1, keepdims=True) * inv_ld - mu_f * mu_f, 0.0)
    r_f = jax.lax.rsqrt(var_f + _EPS)

    # ---- a_0 = -0.5 + hardsigmoid(w_a_1(layer_norm2(x.view(B, -1)))) -------
    pre_a0 = r_f * (xwa - mu_f * cswag) + baf                        # (TB, S)
    a0 = jnp.clip(pre_a0 * (1.0 / 6.0) + 0.5, 0.0, 1.0) - 0.5

    # ---- c = -0.5 + hardsigmoid(w_c_1(layer_c(x))), all L rows at once -----
    # One (TB,2L)@(2L,2LS) matmul yields both the rstd broadcast and the
    # (rstd*mu)*csvc term (csvc is baked into the RHS).
    bl = jnp.dot(jnp.concatenate([rstd, rstd * mu], axis=-1), bc_ref[...],
                 preferred_element_type=f32)                         # (TB, 2*LS)
    pre_c = bl[:, 0:LS] * tc - bl[:, LS:2 * LS] + bcf
    c_all = jnp.clip(pre_c * (1.0 / 6.0) + 0.5, 0.0, 1.0) - 0.5      # (TB, LS)

    # ---- Gamma recurrence + y as ONE matmul: [a0 | c_all] @ M --------------
    # M columns: [alpha_0 .. alpha_L ((L+1)*S) | y (L)]
    ay = jnp.dot(jnp.concatenate([a0, c_all], axis=-1), rec_ref[...],
                 preferred_element_type=f32)                         # (TB, (L+1)*S+L)

    # ---- single lane-dense packed store: [alpha | y | sigma | pad] ---------
    parts = [ay, sigma]
    pad = out_ref.shape[1] - (ay.shape[1] + sigma.shape[1])
    if pad:
        parts.append(jnp.zeros((TB, pad), f32))
    out_ref[...] = jnp.concatenate(parts, axis=-1)


# ------------------------ host-side parameter packing ----------------------- #

def _pack_params(p, L, D, S):
    """Fold LayerNorm affines into the linear weights and build the fused
    matrices consumed by the kernel (pure host-side linear algebra)."""
    f32 = jnp.float32
    LD, LS = L * D, L * S
    g1 = p["ln1_w"].reshape(D).astype(f32)
    b1 = p["ln1_b"].reshape(D).astype(f32)
    gc = p["lnc_w"].reshape(D).astype(f32)
    bc = p["lnc_b"].reshape(D).astype(f32)
    g2 = p["ln2_w"].reshape(LD).astype(f32)
    b2 = p["ln2_b"].reshape(LD).astype(f32)
    w1 = p["w1_w"].reshape(D).astype(f32)          # (D, 1) -> (D,)
    w1b = p["w1_b"].reshape(()).astype(f32)
    wc = p["wc1_w"].astype(f32)                    # (D, S)
    wcb = p["wc1_b"].reshape(S).astype(f32)
    wa = p["wa1_w"].astype(f32)                    # (LD, S)
    wab = p["wa1_b"].reshape(S).astype(f32)

    v1 = g1 * w1                                   # (D,)
    vc = gc[:, None] * wc                          # (D, S)
    wag = g2[:, None] * wa                         # (LD, S)

    eye_l = jnp.eye(L, dtype=f32)
    seg = jnp.kron(eye_l, jnp.ones((D, 1), f32))   # (LD, L)   per-row sums
    v1b = jnp.kron(eye_l, v1.reshape(D, 1))        # (LD, L)   sigma dot
    vcb = jnp.kron(eye_l, vc)                      # (LD, LS)  c dot (block diag)

    # fused weight, consumed with LHS = [x | x*x]:
    #   top LD rows: [seg | v1b | vcb | wag | 0 ]      (uses x)
    #   bot LD rows: [ 0  |  0  |  0  |  0  | seg]     (uses x*x -> qsum)
    nbig0 = 2 * L + LS + S
    top = jnp.concatenate([seg, v1b, vcb, wag, jnp.zeros((LD, L), f32)], axis=1)
    bot = jnp.concatenate([jnp.zeros((LD, nbig0), f32), seg], axis=1)
    wbig = jnp.concatenate([top, bot], axis=0)     # (2*LD, 2L + LS + S + L)

    # broadcast matmul RHS, consumed with LHS = [rstd | rstd*mu]:
    #   block_diag( kron(I_L, ones(1,S)),  kron(I_L, csvc_row) )
    csvc = jnp.sum(vc, axis=0)                     # (S,)
    segs = jnp.kron(eye_l, jnp.ones((1, S), f32))  # (L, LS)
    segc = jnp.kron(eye_l, csvc.reshape(1, S))     # (L, LS)
    bc_rhs = jnp.concatenate(
        [jnp.concatenate([segs, jnp.zeros((L, LS), f32)], axis=1),
         jnp.concatenate([jnp.zeros((L, LS), f32), segc], axis=1)], axis=0)

    # recurrence matrix M:  [a0 | c_0 .. c_{L-1}] @ M = [alpha_0..alpha_L | y]
    GT = p["gammaT"].astype(f32)
    powers = [jnp.eye(S, dtype=f32)]
    for _ in range(L):
        powers.append(powers[-1] @ GT)
    row_blocks = [[powers[j] for j in range(L + 1)]]           # a0 row block
    for i in range(L):                                         # c_i row blocks
        row_blocks.append([powers[j - 1 - i] if j >= i + 1
                           else jnp.zeros((S, S), f32) for j in range(L + 1)])
    M_alpha = jnp.concatenate(
        [jnp.concatenate(rb, axis=1) for rb in row_blocks], axis=0)  # (NA, NA)
    e01 = jnp.zeros((S, 1), f32).at[0, 0].set(1.0).at[1, 0].set(1.0)
    M_y = jnp.concatenate(
        [M_alpha[:, (j + 1) * S:(j + 2) * S] @ e01 for j in range(L)], axis=1)
    rec = jnp.concatenate([M_alpha, M_y], axis=1)              # (NA, NA + L)

    # packed constants buffer
    cw = max(128, ((LS + 127) // 128) * 128)
    cst = jnp.zeros((8, cw), f32)
    cst = cst.at[0, 0:LS].set(jnp.tile(jnp.dot(bc, wc) + wcb, L))        # bcf
    cst = cst.at[1, 0:S].set(jnp.sum(wag, axis=0))                        # cswag
    cst = cst.at[2, 0:S].set(jnp.dot(b2, wa) + wab)                       # baf
    cst = cst.at[3, 0:L].set(jnp.full((L,), jnp.sum(v1)))                 # sv1
    cst = cst.at[4, 0:L].set(jnp.full((L,), jnp.dot(b1, w1) + w1b))       # b1f

    return dict(wbig=wbig, bc_rhs=bc_rhs, rec=rec, cst=cst)


# -------------------------------- wrapper ----------------------------------- #

def ssm_layer_forward(x, params):
    """Returns (y_hat (B,L,1), alpha (B,L+1,S,1), Sigma (B,L,1))."""
    B, L, D = x.shape
    S = params["wc1_w"].shape[1]
    LD = L * D
    NA = (L + 1) * S
    pk = _pack_params(params, L, D, S)

    # Batch tiling: per-grid-step overhead dominates this tiny per-row
    # workload, so use big tiles (512 rows) and a single step for small B.
    if B <= 512:
        tb, nb = B, 1
    else:
        tb = 512
        nb = pl.cdiv(B, tb)
    b_pad = nb * tb

    x2 = x.reshape(B, LD).astype(jnp.float32)
    if b_pad != B:
        x2 = jnp.pad(x2, ((0, b_pad - B), (0, 0)))

    # single lane-dense packed output: [alpha (NA) | y (L) | sigma (L) | pad]
    ow = ((NA + 2 * L + 127) // 128) * 128

    def rep(shape):
        n = len(shape)
        return pl.BlockSpec(shape, lambda b, _n=n: (0,) * _n)

    nbig = 2 * L + L * S + S + L
    in_specs = [
        pl.BlockSpec((tb, LD), lambda b: (b, 0)),        # x tile
        rep((2 * LD, nbig)),                             # fused big weight
        rep((2 * L, 2 * L * S)),                         # broadcast RHS
        rep((NA, NA + L)),                               # recurrence matrix
        rep(pk["cst"].shape),                            # packed constants
    ]
    out_specs = pl.BlockSpec((tb, ow), lambda b: (b, 0))
    out_shape = jax.ShapeDtypeStruct((b_pad, ow), jnp.float32)

    out = pl.pallas_call(
        functools.partial(ssm_kernel, L=L, S=S, D=D),
        out_shape=out_shape,
        grid=(nb,),
        in_specs=in_specs,
        out_specs=out_specs,
        compiler_params=pltpu.CompilerParams(
            dimension_semantics=("parallel",)),
    )(x2, pk["wbig"], pk["bc_rhs"], pk["rec"], pk["cst"])

    # glue: drop batch padding, unpack the slab, restore PyTorch shapes
    alpha = out[:B, 0:NA].reshape(B, L + 1, S, 1)
    y = out[:B, NA:NA + L].reshape(B, L, 1)
    sigma = out[:B, NA + L:NA + 2 * L].reshape(B, L, 1)
    return y, alpha, sigma


# ----------------------------- parameter init -------------------------------- #

def init_params(key, d_in, L, S):
    def linear(k, fan_in, fan_out):
        bound = 1.0 / np.sqrt(fan_in)
        kw, kb = jax.random.split(k)
        w = jax.random.uniform(kw, (fan_in, fan_out), jnp.float32, -bound, bound)
        b = jax.random.uniform(kb, (1, fan_out), jnp.float32, -bound, bound)
        return w, b

    k1, k2, k3 = jax.random.split(key, 3)
    w1_w, w1_b = linear(k1, d_in, 1)          # nn.Linear(d_in, 1)
    wc1_w, wc1_b = linear(k2, d_in, S)        # nn.Linear(d_in, S)
    wa1_w, wa1_b = linear(k3, L * d_in, S)    # nn.Linear(L*d_in, S)

    # LayerNorms use PyTorch default init: weight = 1, bias = 0
    params = dict(
        ln1_w=jnp.ones((1, d_in), jnp.float32), ln1_b=jnp.zeros((1, d_in), jnp.float32),
        lnc_w=jnp.ones((1, d_in), jnp.float32), lnc_b=jnp.zeros((1, d_in), jnp.float32),
        ln2_w=jnp.ones((1, L * d_in), jnp.float32), ln2_b=jnp.zeros((1, L * d_in), jnp.float32),
        w1_w=w1_w, w1_b=w1_b, wc1_w=wc1_w, wc1_b=wc1_b, wa1_w=wa1_w, wa1_b=wa1_b,
    )

    # Gamma (identical for every batch element in the PyTorch code)
    G = jnp.zeros((S, S), jnp.float32)
    G = G.at[2:, 1:-1].set(jnp.eye(S - 2, dtype=jnp.float32))
    G = G.at[1, 1:].set(-1.0)
    G = G.at[0, 0].set(1.0)
    params["gammaT"] = G.T
    params["gamma"] = G
    return params


# ------------------------------ pure-JAX ref --------------------------------- #

def ssm_layer_ref(x, p):
    B, L, D = x.shape
    S = p["wc1_w"].shape[1]
    hs = lambda t: jnp.clip(t / 6.0 + 0.5, 0.0, 1.0)

    def ln(v, w, b, eps=1e-6):
        mu = v.mean(-1, keepdims=True)
        var = ((v - mu) ** 2).mean(-1, keepdims=True)
        return (v - mu) / jnp.sqrt(var + eps) * w + b

    sigma = jax.nn.softplus(ln(x, p["ln1_w"], p["ln1_b"]) @ p["w1_w"] + p["w1_b"])
    c = -0.5 + hs(ln(x, p["lnc_w"], p["lnc_b"]) @ p["wc1_w"] + p["wc1_b"])
    a0 = -0.5 + hs(ln(x.reshape(B, -1), p["ln2_w"], p["ln2_b"]) @ p["wa1_w"] + p["wa1_b"])

    alphas = [a0]
    for i in range(L):
        alphas.append(alphas[-1] @ p["gamma"].T + c[:, i])
    alpha = jnp.stack(alphas, axis=1)[..., None]          # (B, L+1, S, 1)
    y = alpha[:, 1:, 0] + alpha[:, 1:, 1]                  # (B, L, 1)
    return y, alpha, sigma


# ---------------------------------- main ------------------------------------- #

if __name__ == "__main__":
    L, d_in, S = 8, 16, 8            # d_hid (32) only feeds unused submodules
    key = jax.random.PRNGKey(0)
    kx, kp, kx2 = jax.random.split(key, 3)
    params = init_params(kp, d_in, L, S)

    # small-batch path (single grid step, block == full array)
    B = 2
    x = jax.random.normal(kx, (B, L, d_in), jnp.float32)
    y, alpha, sigma = ssm_layer_forward(x, params)
    jax.block_until_ready((y, alpha, sigma))
    y_r, alpha_r, sigma_r = ssm_layer_ref(x, params)
    np.testing.assert_allclose(np.asarray(y), np.asarray(y_r), rtol=2e-4, atol=2e-4)
    np.testing.assert_allclose(np.asarray(alpha), np.asarray(alpha_r), rtol=2e-4, atol=2e-4)
    np.testing.assert_allclose(np.asarray(sigma), np.asarray(sigma_r), rtol=2e-4, atol=2e-4)
    assert y.shape == (B, L, 1) and alpha.shape == (B, L + 1, S, 1) and sigma.shape == (B, L, 1)

    # large-batch path (multi-step grid, 512-row tiles, batch padding)
    B2 = 600
    x_big = jax.random.normal(kx2, (B2, L, d_in), jnp.float32)
    y2, alpha2, sigma2 = ssm_layer_forward(x_big, params)
    jax.block_until_ready((y2, alpha2, sigma2))
    y2_r, alpha2_r, sigma2_r = ssm_layer_ref(x_big, params)
    np.testing.assert_allclose(np.asarray(y2), np.asarray(y2_r), rtol=2e-4, atol=2e-4)
    np.testing.assert_allclose(np.asarray(alpha2), np.asarray(alpha2_r), rtol=2e-4, atol=2e-4)
    np.testing.assert_allclose(np.asarray(sigma2), np.asarray(sigma2_r), rtol=2e-4, atol=2e-4)

    print("KERNEL_OK")
</pallas_src>

<mosaic_0001>
module attributes {stable_mosaic.version = 11 : i64} {
  func.func @ssm_kernel(%arg0: i32, %arg1: memref<2x128xf32, #tpu.memory_space<vmem>>, %arg2: memref<256x96xf32, #tpu.memory_space<vmem>>, %arg3: memref<16x128xf32, #tpu.memory_space<vmem>>, %arg4: memref<72x80xf32, #tpu.memory_space<vmem>>, %arg5: memref<8x128xf32, #tpu.memory_space<vmem>>, %arg6: memref<2x128xf32, #tpu.memory_space<vmem>>) attributes {dimension_semantics = [#tpu.dimension_semantics<parallel>], iteration_bounds = array<i64: 1>, scalar_prefetch = 0 : i64, scratch_operands = 0 : i64, tpu.core_type = #tpu.core_type<tc>, window_params = [{transform_indices = @transform_0, window_bounds = array<i64: 2, 128>}, {pipeline_mode = #tpu.pipeline_mode<synchronous>, transform_indices = @transform_1, window_bounds = array<i64: 256, 96>}, {pipeline_mode = #tpu.pipeline_mode<synchronous>, transform_indices = @transform_2, window_bounds = array<i64: 16, 128>}, {pipeline_mode = #tpu.pipeline_mode<synchronous>, transform_indices = @transform_3, window_bounds = array<i64: 72, 80>}, {pipeline_mode = #tpu.pipeline_mode<synchronous>, transform_indices = @transform_4, window_bounds = array<i64: 8, 128>}, {transform_indices = @transform_5, window_bounds = array<i64: 2, 128>}]} {
    %c0 = arith.constant 0 : index
    %c0_0 = arith.constant 0 : index
    %0 = vector.load %arg1[%c0, %c0_0] : memref<2x128xf32, #tpu.memory_space<vmem>>, vector<2x128xf32>
    %1 = arith.mulf %0, %0 : vector<2x128xf32>
    %2 = tpu.concatenate %0, %1 in 1 : vector<2x128xf32>, vector<2x128xf32> -> vector<2x256xf32>
    %c0_1 = arith.constant 0 : index
    %c0_2 = arith.constant 0 : index
    %3 = vector.load %arg2[%c0_1, %c0_2] : memref<256x96xf32, #tpu.memory_space<vmem>>, vector<256x96xf32>
    %cst = arith.constant dense<0.000000e+00> : vector<2x96xf32>
    %4 = tpu.matmul %2, %3, %cst {dimension_numbers = #tpu.dot_dimension_numbers<[1], [0], [0], [1], [0, 0, 1, 1], [], []>} : vector<2x256xf32>, vector<256x96xf32>, vector<2x96xf32> -> vector<2x96xf32>
    %5 = vector.extract_strided_slice %4 {offsets = [0, 0], sizes = [2, 8], strides = [1, 1]} : vector<2x96xf32> to vector<2x8xf32>
    %6 = vector.extract_strided_slice %4 {offsets = [0, 8], sizes = [2, 8], strides = [1, 1]} : vector<2x96xf32> to vector<2x8xf32>
    %7 = vector.extract_strided_slice %4 {offsets = [0, 16], sizes = [2, 64], strides = [1, 1]} : vector<2x96xf32> to vector<2x64xf32>
    %8 = vector.extract_strided_slice %4 {offsets = [0, 80], sizes = [2, 8], strides = [1, 1]} : vector<2x96xf32> to vector<2x8xf32>
    %9 = vector.extract_strided_slice %4 {offsets = [0, 88], sizes = [2, 8], strides = [1, 1]} : vector<2x96xf32> to vector<2x8xf32>
    %c0_3 = arith.constant 0 : index
    %c0_4 = arith.constant 0 : index
    %10 = vector.load %arg5[%c0_3, %c0_4] : memref<8x128xf32, #tpu.memory_space<vmem>>, vector<1x64xf32>
    %c1 = arith.constant 1 : index
    %c0_5 = arith.constant 0 : index
    %11 = vector.load %arg5[%c1, %c0_5] : memref<8x128xf32, #tpu.memory_space<vmem>>, vector<1x8xf32>
    %c2 = arith.constant 2 : index
    %c0_6 = arith.constant 0 : index
    %12 = vector.load %arg5[%c2, %c0_6] : memref<8x128xf32, #tpu.memory_space<vmem>>, vector<1x8xf32>
    %c3 = arith.constant 3 : index
    %c0_7 = arith.constant 0 : index
    %13 = vector.load %arg5[%c3, %c0_7] : memref<8x128xf32, #tpu.memory_space<vmem>>, vector<1x8xf32>
    %c4 = arith.constant 4 : index
    %c0_8 = arith.constant 0 : index
    %14 = vector.load %arg5[%c4, %c0_8] : memref<8x128xf32, #tpu.memory_space<vmem>>, vector<1x8xf32>
    %cst_9 = arith.constant 6.250000e-02 : f32
    %15 = vector.broadcast %cst_9 : f32 to vector<2x8xf32>
    %16 = arith.mulf %5, %15 : vector<2x8xf32>
    %cst_10 = arith.constant 6.250000e-02 : f32
    %17 = vector.broadcast %cst_10 : f32 to vector<2x8xf32>
    %18 = arith.mulf %9, %17 : vector<2x8xf32>
    %19 = arith.mulf %16, %16 : vector<2x8xf32>
    %20 = arith.subf %18, %19 : vector<2x8xf32>
    %cst_11 = arith.constant 0.000000e+00 : f32
    %21 = vector.broadcast %cst_11 : f32 to vector<2x8xf32>
    %22 = arith.maximumf %20, %21 : vector<2x8xf32>
    %cst_12 = arith.constant 9.99999997E-7 : f32
    %23 = vector.broadcast %cst_12 : f32 to vector<2x8xf32>
    %24 = arith.addf %22, %23 : vector<2x8xf32>
    %25 = math.rsqrt %24 : vector<2x8xf32>
    %26 = vector.broadcast %13 : vector<1x8xf32> to vector<2x8xf32>
    %27 = arith.mulf %16, %26 : vector<2x8xf32>
    %28 = arith.subf %6, %27 : vector<2x8xf32>
    %29 = arith.mulf %25, %28 : vector<2x8xf32>
    %30 = vector.broadcast %14 : vector<1x8xf32> to vector<2x8xf32>
    %31 = arith.addf %29, %30 : vector<2x8xf32>
    %cst_13 = arith.constant 0.000000e+00 : f32
    %32 = vector.broadcast %cst_13 : f32 to vector<2x8xf32>
    %33 = arith.maximumf %31, %32 : vector<2x8xf32>
    %34 = math.absf %31 : vector<2x8xf32>
    %cst_14 = arith.constant 0.000000e+00 : f32
    %35 = vector.broadcast %cst_14 : f32 to vector<2x8xf32>
    %36 = arith.subf %35, %34 : vector<2x8xf32>
    %37 = math.exp %36 : vector<2x8xf32>
    %38 = math.log1p %37 : vector<2x8xf32>
    %39 = arith.addf %33, %38 : vector<2x8xf32>
    %cst_15 = arith.constant dense<0.000000e+00> : vector<2xf32>
    %40 = vector.multi_reduction <add>, %5, %cst_15 [1] : vector<2x8xf32> to vector<2xf32>
    %41 = vector.shape_cast %40 : vector<2xf32> to vector<2x1xf32>
    %cst_16 = arith.constant 7.812500e-03 : f32
    %42 = vector.broadcast %cst_16 : f32 to vector<2x1xf32>
    %43 = arith.mulf %41, %42 : vector<2x1xf32>
    %cst_17 = arith.constant dense<0.000000e+00> : vector<2xf32>
    %44 = vector.multi_reduction <add>, %9, %cst_17 [1] : vector<2x8xf32> to vector<2xf32>
    %45 = vector.shape_cast %44 : vector<2xf32> to vector<2x1xf32>
    %cst_18 = arith.constant 7.812500e-03 : f32
    %46 = vector.broadcast %cst_18 : f32 to vector<2x1xf32>
    %47 = arith.mulf %45, %46 : vector<2x1xf32>
    %48 = arith.mulf %43, %43 : vector<2x1xf32>
    %49 = arith.subf %47, %48 : vector<2x1xf32>
    %cst_19 = arith.constant 0.000000e+00 : f32
    %50 = vector.broadcast %cst_19 : f32 to vector<2x1xf32>
    %51 = arith.maximumf %49, %50 : vector<2x1xf32>
    %cst_20 = arith.constant 9.99999997E-7 : f32
    %52 = vector.broadcast %cst_20 : f32 to vector<2x1xf32>
    %53 = arith.addf %51, %52 : vector<2x1xf32>
    %54 = math.rsqrt %53 : vector<2x1xf32>
    %55 = vector.broadcast %43 : vector<2x1xf32> to vector<2x8xf32>
    %56 = vector.broadcast %11 : vector<1x8xf32> to vector<2x8xf32>
    %57 = arith.mulf %55, %56 : vector<2x8xf32>
    %58 = arith.subf %8, %57 : vector<2x8xf32>
    %59 = vector.broadcast %54 : vector<2x1xf32> to vector<2x8xf32>
    %60 = arith.mulf %59, %58 : vector<2x8xf32>
    %61 = vector.broadcast %12 : vector<1x8xf32> to vector<2x8xf32>
    %62 = arith.addf %60, %61 : vector<2x8xf32>
    %cst_21 = arith.constant 0.166666672 : f32
    %63 = vector.broadcast %cst_21 : f32 to vector<2x8xf32>
    %64 = arith.mulf %62, %63 : vector<2x8xf32>
    %cst_22 = arith.constant 5.000000e-01 : f32
    %65 = vector.broadcast %cst_22 : f32 to vector<2x8xf32>
    %66 = arith.addf %64, %65 : vector<2x8xf32>
    %cst_23 = arith.constant 0.000000e+00 : f32
    %cst_24 = arith.constant 1.000000e+00 : f32
    %67 = vector.broadcast %cst_23 : f32 to vector<2x8xf32>
    %68 = arith.maximumf %67, %66 : vector<2x8xf32>
    %69 = vector.broadcast %cst_24 : f32 to vector<2x8xf32>
    %70 = arith.minimumf %69, %68 : vector<2x8xf32>
    %cst_25 = arith.constant 5.000000e-01 : f32
    %71 = vector.broadcast %cst_25 : f32 to vector<2x8xf32>
    %72 = arith.subf %70, %71 : vector<2x8xf32>
    %73 = arith.mulf %25, %16 : vector<2x8xf32>
    %74 = tpu.concatenate %25, %73 in 1 : vector<2x8xf32>, vector<2x8xf32> -> vector<2x16xf32>
    %c0_26 = arith.constant 0 : index
    %c0_27 = arith.constant 0 : index
    %75 = vector.load %arg3[%c0_26, %c0_27] : memref<16x128xf32, #tpu.memory_space<vmem>>, vector<16x128xf32>
    %cst_28 = arith.constant dense<0.000000e+00> : vector<2x128xf32>
    %76 = tpu.matmul %74, %75, %cst_28 {dimension_numbers = #tpu.dot_dimension_numbers<[1], [0], [0], [1], [0, 0, 1, 1], [], []>} : vector<2x16xf32>, vector<16x128xf32>, vector<2x128xf32> -> vector<2x128xf32>
    %77 = vector.extract_strided_slice %76 {offsets = [0, 0], sizes = [2, 64], strides = [1, 1]} : vector<2x128xf32> to vector<2x64xf32>
    %78 = arith.mulf %77, %7 : vector<2x64xf32>
    %79 = vector.extract_strided_slice %76 {offsets = [0, 64], sizes = [2, 64], strides = [1, 1]} : vector<2x128xf32> to vector<2x64xf32>
    %80 = arith.subf %78, %79 : vector<2x64xf32>
    %81 = vector.broadcast %10 : vector<1x64xf32> to vector<2x64xf32>
    %82 = arith.addf %80, %81 : vector<2x64xf32>
    %cst_29 = arith.constant 0.166666672 : f32
    %83 = vector.broadcast %cst_29 : f32 to vector<2x64xf32>
    %84 = arith.mulf %82, %83 : vector<2x64xf32>
    %cst_30 = arith.constant 5.000000e-01 : f32
    %85 = vector.broadcast %cst_30 : f32 to vector<2x64xf32>
    %86 = arith.addf %84, %85 : vector<2x64xf32>
    %cst_31 = arith.constant 0.000000e+00 : f32
    %cst_32 = arith.constant 1.000000e+00 : f32
    %87 = vector.broadcast %cst_31 : f32 to vector<2x64xf32>
    %88 = arith.maximumf %87, %86 : vector<2x64xf32>
    %89 = vector.broadcast %cst_32 : f32 to vector<2x64xf32>
    %90 = arith.minimumf %89, %88 : vector<2x64xf32>
    %cst_33 = arith.constant 5.000000e-01 : f32
    %91 = vector.broadcast %cst_33 : f32 to vector<2x64xf32>
    %92 = arith.subf %90, %91 : vector<2x64xf32>
    %93 = tpu.concatenate %72, %92 in 1 : vector<2x8xf32>, vector<2x64xf32> -> vector<2x72xf32>
    %c0_34 = arith.constant 0 : index
    %c0_35 = arith.constant 0 : index
    %94 = vector.load %arg4[%c0_34, %c0_35] : memref<72x80xf32, #tpu.memory_space<vmem>>, vector<72x80xf32>
    %cst_36 = arith.constant dense<0.000000e+00> : vector<2x80xf32>
    %95 = tpu.matmul %93, %94, %cst_36 {dimension_numbers = #tpu.dot_dimension_numbers<[1], [0], [0], [1], [0, 0, 1, 1], [], []>} : vector<2x72xf32>, vector<72x80xf32>, vector<2x80xf32> -> vector<2x80xf32>
    %cst_37 = arith.constant 0.000000e+00 : f32
    %96 = vector.broadcast %cst_37 : f32 to vector<2x40xf32>
    %97 = tpu.concatenate %95, %39, %96 in 1 : vector<2x80xf32>, vector<2x8xf32>, vector<2x40xf32> -> vector<2x128xf32>
    %c0_38 = arith.constant 0 : index
    %c0_39 = arith.constant 0 : index
    %98 = vector.load %arg6[%c0_38, %c0_39] : memref<2x128xf32, #tpu.memory_space<vmem>>, vector<2x128xf32>
    tpu.vector_store %arg6[%c0_38, %c0_39], %97 {strides = array<i32>} : memref<2x128xf32, #tpu.memory_space<vmem>>, vector<2x128xf32>,
    return
  }
  func.func @transform_0(%arg0: i32) -> (i32, i32) {
    %c0_i32 = arith.constant 0 : i32
    %c0_i32_0 = arith.constant 0 : i32
    return %arg0, %c0_i32 : i32, i32
  }
  func.func @transform_1(%arg0: i32) -> (i32, i32) {
    %c0_i32 = arith.constant 0 : i32
    %c0_i32_0 = arith.constant 0 : i32
    %c0_i32_1 = arith.constant 0 : i32
    return %c0_i32, %c0_i32_0 : i32, i32
  }
  func.func @transform_2(%arg0: i32) -> (i32, i32) {
    %c0_i32 = arith.constant 0 : i32
    %c0_i32_0 = arith.constant 0 : i32
    %c0_i32_1 = arith.constant 0 : i32
    return %c0_i32, %c0_i32_0 : i32, i32
  }
  func.func @transform_3(%arg0: i32) -> (i32, i32) {
    %c0_i32 = arith.constant 0 : i32
    %c0_i32_0 = arith.constant 0 : i32
    %c0_i32_1 = arith.constant 0 : i32
    return %c0_i32, %c0_i32_0 : i32, i32
  }
  func.func @transform_4(%arg0: i32) -> (i32, i32) {
    %c0_i32 = arith.constant 0 : i32
    %c0_i32_0 = arith.constant 0 : i32
    %c0_i32_1 = arith.constant 0 : i32
    return %c0_i32, %c0_i32_0 : i32, i32
  }
  func.func @transform_5(%arg0: i32) -> (i32, i32) {
    %c0_i32 = arith.constant 0 : i32
    %c0_i32_0 = arith.constant 0 : i32
    return %arg0, %c0_i32 : i32, i32
  }
}

</mosaic_0001>

<bundles_post_ra>
// kernel: tpu_custom_call.1
= control target key start
LH: loop header
LB: loop body
LE: loop exit
PB: predicated region body
PF: predicated region fallthrough
CT: control target
= control target key end

     0   :  { %s593_s0 = inlined_call_operand.vmem [shape: f32[2,128], index: 0, kind: input, shape index: {}]   ;;  %s594_s1 = inlined_call_operand.vmem [shape: f32[256,96], index: 1, kind: input, shape index: {}]   ;;  %s595_s2 = inlined_call_operand.vmem [shape: f32[16,128], index: 2, kind: input, shape index: {}]   ;;  %s596_s3 = inlined_call_operand.vmem [shape: f32[72,80], index: 3, kind: input, shape index: {}]   ;;  %s597_s4 = inlined_call_operand.vmem [shape: f32[8,128], index: 4, kind: input, shape index: {}]   ;;  %s598_s5 = inlined_call_operand.hbm [shape: f32[2,128], index: 5, kind: output, shape index: {}]  }
   0x1   :  { %v38_v0 = vld [vmem:[%s594_s1 + $0x78] sm:$0xff]  ;;  %v37_v2 = vld [vmem:[%s594_s1 + $0x70] sm:$0xff]  ;;  %v36_v4 = vld [vmem:[%s594_s1 + $0x68] sm:$0xff] }
   0x2   :  { %v54_v1 = vld [vmem:[%s594_s1 + $0xf8] sm:$0xff]  ;;  %55 = vmatpush.msra.mxu0 %v38_v0  ;;  %v53_v3 = vld [vmem:[%s594_s1 + $0xf0] sm:$0xff]  ;;  %v52_v5 = vld [vmem:[%s594_s1 + $0xe8] sm:$0xff] }
   0x3   :  { %75 = vmatpush.msra.mxu1 %v54_v1  ;;  %v35_v6 = vld [vmem:[%s594_s1 + $0x60] sm:$0xff]  ;;  %v34_v8 = vld [vmem:[%s594_s1 + $0x58] sm:$0xff]  ;;  %v33_v10 = vld [vmem:[%s594_s1 + $0x50] sm:$0xff] }
   0x4   :  { %56 = vmatpush.msra.mxu0 %v37_v2  ;;  %v51_v7 = vld [vmem:[%s594_s1 + $0xe0] sm:$0xff]  ;;  %v50_v9 = vld [vmem:[%s594_s1 + $0xd8] sm:$0xff]  ;;  %v49_v11 = vld [vmem:[%s594_s1 + $0xd0] sm:$0xff] }
   0x5   :  { %76 = vmatpush.msra.mxu1 %v53_v3  ;;  %v32_v12 = vld [vmem:[%s594_s1 + $0x48] sm:$0xff]  ;;  %v31_v14 = vld [vmem:[%s594_s1 + $0x40] sm:$0xff] }
   0x6   :  { %57 = vmatpush.msra.mxu0 %v36_v4  ;;  %v48_v13 = vld [vmem:[%s594_s1 + $0xc8] sm:$0xff]  ;;  %v47_v15 = vld [vmem:[%s594_s1 + $0xc0] sm:$0xff] }
   0x7   :  { %77 = vmatpush.msra.mxu1 %v52_v5 }
   0x8   :  { %58 = vmatpush.msra.mxu0 %v35_v6 }
   0x9   :  { %78 = vmatpush.msra.mxu1 %v51_v7 }
   0xa   :  { %59 = vmatpush.msra.mxu0 %v34_v8 }
   0xb   :  { %79 = vmatpush.msra.mxu1 %v50_v9 }
   0xc   :  { %60 = vmatpush.msra.mxu0 %v33_v10 }
   0xd   :  { %80 = vmatpush.msra.mxu1 %v49_v11 }
   0xe   :  { %10 = vsyncpa [#allocation3], 0  ;;  %61 = vmatpush.msra.mxu0 %v32_v12  ;;  %v30_v16 = vld [vmem:[%s594_s1 + $0x38] sm:$0xff]  ;;  %v29_v18 = vld [vmem:[%s594_s1 + $0x30] sm:$0xff]  ;;  %vm152_vm0 = vcmask 58368   ;;  %s376_s9 = smov 48  }
   0xf   :  { %81 = vmatpush.msra.mxu1 %v48_v13  ;;  %v46_v17 = vld [vmem:[%s594_s1 + $0xb8] sm:$0xff]  ;;  %v45_v19 = vld [vmem:[%s594_s1 + $0xb0] sm:$0xff]  ;;  %v28_v20 = vld [vmem:[%s594_s1 + $0x28] sm:$0xff]  ;;  %s377_s12 = smov 80   ;;  %s378_s13 = smov 112   ;;  %vm211_vm4 = vcmask 64512  }
  0x10   :  { %62 = vmatpush.msra.mxu0 %v31_v14  ;;  %v44_v21 = vld [vmem:[%s594_s1 + $0xa8] sm:$0xff]  ;;  %v27_v22 = vld [vmem:[%s594_s1 + $0x20] sm:$0xff]  ;;  %v26_v24 = vld [vmem:[%s594_s1 + $0x18] sm:$0xff]  ;;  %vm215_vm5 = vcmask 130048   ;;  %s379_s18 = smov 64   ;;  %s380_s22 = smov 8  }
  0x11   :  { %82 = vmatpush.msra.mxu1 %v47_v15  ;;  %v43_v23 = vld [vmem:[%s594_s1 + $0xa0] sm:$0xff]  ;;  %v42_v25 = vld [vmem:[%s594_s1 + $0x98] sm:$0xff]  ;;  %v25_v26 = vld [vmem:[%s594_s1 + $0x10] sm:$0xff]  ;;  %vm273_vm9 = vcmask 588800   ;;  %vm301_vm11 = vcmask 654336   ;;  %vm303_vm12 = vcmask 719872  }
  0x12   :  { %63 = vmatpush.msra.mxu0 %v30_v16  ;;  %v41_v27 = vld [vmem:[%s594_s1 + $0x90] sm:$0xff]  ;;  %v21_v28 = vld [vmem:[%s593_s0] sm:$0x3]  ;;  %v24_v29 = vld [vmem:[%s594_s1 + $0x8] sm:$0xff]  ;;  %s374_s0 = smov 40  }
  0x13   :  { %83 = vmatpush.msra.mxu1 %v46_v17  ;;  %v40_v30 = vld [vmem:[%s594_s1 + $0x88] sm:$0xff]  ;;  %v23_v31 = vld [vmem:[%s594_s1] sm:$0xff]  ;;  %v22_v33 = vmul.f32 %v21_v28, %v21_v28 }
  0x14   :  { %64 = vmatpush.msra.mxu0 %v29_v18  ;;  %v39_v32 = vld [vmem:[%s594_s1 + $0x80] sm:$0xff]  ;;  %s375_s1 = smov 88   ;;  %v214_v59 = vld [vmem:[%s595_s2 + $0x8] sm:$0xff] }
  0x15   :  { %84 = vmatpush.msra.mxu1 %v45_v19  ;;  %v335_v55 = vld [vmem:[%s597_s4 + $0x1] ss:$0 sm:$0xff]  ;;  %233 = vmatpush.msra.mxu2 %v214_v59  ;;  %v336_v1 = vld [vmem:[%s597_s4 + $0x2] ss:$0 sm:$0xff]  ;;  %v337_v16 = vld [vmem:[%s597_s4] ss:$0 sm:$0xff] }
  0x16   :  { %65 = vmatpush.msra.mxu0 %v28_v20  ;;  %v213_v60 = vld [vmem:[%s595_s2] sm:$0xff]  ;;  %s313_s2 = sshll.u32 %s598_s5, 4  ;;  %s314_s2 = int_to_ptr.hbm [resolvable:$true] %s313_s2 }
  0x17   :  { %85 = vmatpush.msra.mxu1 %v44_v21  ;;  %234 = vmatpush.msra.mxu2 %v213_v60 }
  0x18   :  { %66 = vmatpush.msra.mxu0 %v27_v22 }
  0x19   :  { %86 = vmatpush.msra.mxu1 %v43_v23 }
  0x1a   :  { %67 = vmatpush.msra.mxu0 %v26_v24 }
  0x1b   :  { %87 = vmatpush.msra.mxu1 %v42_v25 }
  0x1c   :  { %68 = vmatpush.msra.mxu0 %v25_v26 }
  0x1d   :  { %88 = vmatpush.msra.mxu1 %v41_v27 }
  0x1e   :  { %69 = vmatpush.msra.mxu0 %v24_v29 }
  0x1f   :  { %89 = vmatpush.msra.mxu1 %v40_v30 }
  0x20   :  { %70 = vmatpush.msra.mxu0 %v23_v31 }
  0x21   :  { %90 = vmatpush.msra.mxu1 %v39_v32  ;;  %71 = vmatmul.f32.vlgmr.msra.gmra.mxu0 %v21_v28 }
  0x22   :  { %91 = vmatmul.f32.vlgmr.msra.gmra.mxu1 %v22_v33 }
  0x9e   :  { %v72_v34 = vpop.f32.mrf.mxu0 }
  0x9f   :  { %v92_v35 = vpop.f32.mrf.mxu1 }
  0xa0   :  { %v512_v36 = vadd.f32 %v92_v35, %v72_v34 }
  0xa2   :  { %158 = vrot.lane.b32.xlu2 %v512_v36, %s374_s0  ;;  %v516_v37 = vmul.f32 0.0625, %v512_v36  ;;  %v153_v39 = vsel %vm152_vm0, %v512_v36, 0.0 }
  0xa4   :  { %v101_v38 = vmul.f32 %v516_v37, %v516_v37 }
  0xa6   :  { %103 = vrot.lane.b32.xlu0 %v101_v38, %s375_s1  ;;  %v338_v38 = vld [vmem:[%s597_s4 + $0x3] ss:$0 sm:$0xff] }
  0xae   :  { %199 = vrot.lane.b32.xlu0 %v516_v37, %s375_s1 }
  0xcb   :  { %154 = vadd.xlane.f32.xlu2 %v153_v39  ;;  %v120_v39 = vmul.f32 %v338_v38, %v516_v37 }
  0xfc   :  { %v159_v40 = vpop.permute.xlu2 %158 }
  0xfd   :  { %v161_v41 = vsel %vm152_vm0, %v159_v40, 0.0  ;;  %v272_v40 = vld [vmem:[%s596_s3 + $0x40] sm:$0xff] }
  0xfe   :  { %162 = vadd.xlane.f32.xlu0 %v161_v41  ;;  %v271_v41 = vld [vmem:[%s596_s3 + $0x38] sm:$0xff]  ;;  %284 = vmatpush.msra.mxu3 %v272_v40 }
 0x100   :  { %285 = vmatpush.msra.mxu3 %v271_v41 }
 0x118   :  { %v104_v42 = vpop.permute.xlu0 %103 }
 0x119   :  { %v106_v43 = vsub.f32 %v516_v37, %v104_v42  ;;  %v270_v42 = vld [vmem:[%s596_s3 + $0x30] sm:$0xff]  ;;  %v268_v37 = vld [vmem:[%s596_s3 + $0x20] sm:$0xff] }
 0x11a   :  { %286 = vmatpush.msra.mxu3 %v270_v42 }
 0x11b   :  { %v107_v44 = vmax.f32 %v106_v43, 0.0  ;;  %v269_v43 = vld [vmem:[%s596_s3 + $0x28] sm:$0xff] }
 0x11c   :  { %287 = vmatpush.msra.mxu3 %v269_v43 }
 0x11d   :  { %v108_v45 = vadd.f32 1e-06, %v107_v44  ;;  %v267_v44 = vld [vmem:[%s596_s3 + $0x18] sm:$0xff] }
 0x11e   :  { %288 = vmatpush.msra.mxu3 %v268_v37 }
 0x11f   :  { %340 = vrsqrt.f32 %v108_v45  ;;  %vm115_vm2 = vweird.f32 %v108_v45 }
 0x120   :  { %v200_v53 = vpop.permute.xlu0 %199  ;;  %289 = vmatpush.msra.mxu3 %v267_v44 }
 0x125   :  { %v341_v46 = vpop.eup %340 }
 0x126   :  { %v110_v47 = vmul.f32 %v341_v46, %v108_v45  ;;  %vm116_vm1 = vweird.f32 %v341_v46  ;;  %v266_v45 = vld [vmem:[%s596_s3 + $0x10] sm:$0xff] }
 0x127   :  { %vm117_vm3 = vmor %vm115_vm2, %vm116_vm1  ;;  %290 = vmatpush.msra.mxu3 %v266_v45 }
 0x128   :  { %v111_v48 = vmul.f32 %v341_v46, %v110_v47  ;;  %v264_v47 = vld [vmem:[%s596_s3] sm:$0xff] }
 0x12a   :  { %v112_v49 = vmul.f32 0.5, %v111_v48  ;;  %v339_v48 = vld [vmem:[%s597_s4 + $0x4] ss:$0 sm:$0xff]  ;;  %s382_s4 = smov [#allocation2]  }
 0x12c   :  { %v113_v50 = vsub.f32 1.5, %v112_v49 }
 0x12e   :  { %v114_v51 = vmul.f32 %v341_v46, %v113_v50 }
 0x130   :  { %v525_v52 = vsel %vm117_vm3, %v341_v46, %v114_v51  ;;  %v265_v46 = vld [vmem:[%s596_s3 + $0x8] sm:$0xff]  ;;  %s381_s3 = smov 120  }
 0x131   :  { %204 = vrot.lane.b32.xlu1 %v525_v52, %s374_s0  ;;  %v202_v54 = vmul.f32 %v200_v53, %v525_v52  ;;  %291 = vmatpush.msra.mxu3 %v265_v46 }
 0x133   :  { %292 = vmatpush.msra.mxu3 %v264_v47 }
 0x139   :  { %208 = vrot.lane.b32.xlu1 %v202_v54, %s376_s9 }
 0x13e   :  { %v155_v56 = vpop.xlane.xlu2 %154 }
 0x13f   :  { %v156_v57 = vmul.f32 0.0078125, %v155_v56 }
 0x141   :  { %v180_v58 = vmul.f32 %v335_v55, %v156_v57  ;;  %v165_v4 = vmul.f32 %v156_v57, %v156_v57 }
 0x143   :  { %182 = vrot.lane.b32.xlu1 %v180_v58, %s377_s12 }
 0x14b   :  { %239 = vrot.lane.b32.xlu1 %v512_v36, %s378_s13 }
 0x171   :  { %v163_v2 = vpop.xlane.xlu0 %162 }
 0x172   :  { %v164_v3 = vmul.f32 0.0078125, %v163_v2 }
 0x174   :  { %v166_v5 = vsub.f32 %v164_v3, %v165_v4 }
 0x176   :  { %v167_v6 = vmax.f32 %v166_v5, 0.0 }
 0x178   :  { %v168_v7 = vadd.f32 1e-06, %v167_v6 }
 0x17a   :  { %342 = vrsqrt.f32 %v168_v7  ;;  %vm175_vm7 = vweird.f32 %v168_v7 }
 0x180   :  { %v343_v9 = vpop.eup %342 }
 0x181   :  { %v170_v10 = vmul.f32 %v343_v9, %v168_v7  ;;  %vm176_vm6 = vweird.f32 %v343_v9 }
 0x182   :  { %vm177_vm8 = vmor %vm175_vm7, %vm176_vm6 }
 0x183   :  { %v171_v11 = vmul.f32 %v343_v9, %v170_v10 }
 0x185   :  { %v172_v13 = vmul.f32 0.5, %v171_v11 }
 0x187   :  { %v173_v14 = vsub.f32 1.5, %v172_v13 }
 0x189   :  { %v174_v19 = vmul.f32 %v343_v9, %v173_v14 }
 0x18b   :  { %v178_v23 = vsel %vm177_vm8, %v343_v9, %v174_v19 }
 0x1a3   :  { %v205_v61 = vpop.permute.xlu1 %204 }
 0x1ab   :  { %v209_v62 = vpop.permute.xlu1 %208 }
 0x1ac   :  { %v212_v63 = vsel %vm211_vm4, %v205_v61, %v209_v62 }
 0x1ad   :  { %323 = vmatmul.msk.f32.vlgmr.msra.gmra.mxu2 %vm215_vm5, %v212_v63 }
 0x1b5   :  { %v183_v8 = vpop.permute.xlu1 %182 }
 0x1b6   :  { %v185_v20 = vsub.f32 %v512_v36, %v183_v8 }
 0x1b8   :  { %v186_v25 = vmul.f32 %v185_v20, %v178_v23 }
 0x1bd   :  { %v240_v12 = vpop.permute.xlu1 %239 }
 0x230   :  { %v236_v0 = vpop.f32.mrf.mxu2 }
 0x231   :  { %244 = vrot.lane.b32.xlu1 %v236_v0, %s379_s18  ;;  %v242_v15 = vmul.f32 %v240_v12, %v236_v0 }
 0x239   :  { %189 = vrot.lane.b32.xlu1 %v336_v1, %s377_s12 }
 0x2a3   :  { %v245_v17 = vpop.permute.xlu1 %244 }
 0x2a4   :  { %v247_v18 = vsub.f32 %v242_v15, %v245_v17 }
 0x2a6   :  { %v249_v21 = vadd.f32 %v337_v16, %v247_v18 }
 0x2a8   :  { %v250_v22 = vmul.f32 0.16666667, %v249_v21 }
 0x2aa   :  { %v251_v24 = vadd.f32 0.5, %v250_v22 }
 0x2ab   :  { %v190_v26 = vpop.permute.xlu1 %189 }
 0x2ac   :  { %v252_v27 = vmax.f32 %v251_v24, 0.0  ;;  %v192_v28 = vadd.f32 %v190_v26, %v186_v25 }
 0x2ae   :  { %v193_v29 = vmul.f32 0.16666667, %v192_v28  ;;  %v253_v30 = vmin.f32 %v252_v27, 1.0 }
 0x2b0   :  { %v194_v31 = vadd.f32 0.5, %v193_v29  ;;  %v324_v32 = vadd.f32 -0.5, %v253_v30 }
 0x2b2   :  { %v195_v33 = vmax.f32 %v194_v31, 0.0  ;;  %260 = vrot.lane.b32.xlu2 %v324_v32, %s380_s22 }
 0x2b4   :  { %v196_v34 = vmin.f32 %v195_v33, 1.0 }
 0x2b6   :  { %v322_v35 = vadd.f32 -0.5, %v196_v34 }
 0x2b8   :  { %256 = vrot.lane.b32.xlu1 %v322_v35, %s376_s9 }
 0x2c0   :  { %122 = vrot.lane.b32.xlu1 %v120_v39, %s380_s22 }
 0x2c8   :  { %133 = vrot.lane.b32.xlu1 %v339_v48, %s375_s1  ;;  %s311_s1 = sshll.u32 %s382_s4, 4  ;;  %s312_s1 = int_to_ptr.vmem [resolvable:$true] %s311_s1 }
 0x30c   :  { %v261_v49 = vpop.permute.xlu2 %260 }
 0x32a   :  { %v257_v50 = vpop.permute.xlu1 %256 }
 0x32b   :  { %v263_v51 = vsel %vm211_vm4, %v257_v50, %v261_v49 }
 0x32c   :  { %325 = vmatmul.msk.f32.vlgmr.msra.gmra.mxu3 %vm273_vm9, %v263_v51 }
 0x332   :  { %v123_v53 = vpop.permute.xlu1 %122 }
 0x333   :  { %v125_v54 = vsub.f32 %v512_v36, %v123_v53 }
 0x335   :  { %127 = vrot.lane.b32.xlu0 %v125_v54, %s377_s12 }
 0x33a   :  { %v134_v56 = vpop.permute.xlu1 %133 }
 0x3a7   :  { %v128_v55 = vpop.permute.xlu0 %127 }
 0x3a8   :  { %v130_v57 = vmul.f32 %v128_v55, %v525_v52 }
 0x3aa   :  { %v136_v58 = vadd.f32 %v134_v56, %v130_v57 }
 0x3ac   :  { %v138_v59 = vand.u32 2147483647, %v136_v58  ;;  %v137_v5 = vmax.f32 %v136_v58, 0.0 }
 0x3ae   :  { %v139_v60 = vsub.f32 0.0, %v138_v59 }
 0x3af   :  { %v294_v52 = vpop.f32.mrf.mxu3 }
 0x3b0   :  { %v140_v61 = vmul.f32 1.442695, %v139_v60 }
 0x3b2   :  { %344 = vpow2.f32 %v140_v61 }
 0x3b8   :  { %v345_v62 = vpop.eup %344 }
 0x3b9   :  { %v142_v63 = vadd.f32 1.0, %v345_v62  ;;  %v145_v0 = vmul.f32 -0.5, %v345_v62  ;;  %v148_v2 = vand.u32 2147483647, %v345_v62 }
 0x3bb   :  { %346 = vlog2.f32 %v142_v63  ;;  %v146_v1 = vadd.f32 1.0, %v145_v0  ;;  %vm149_vm10 = vcmp.lt.f32.partialorder %v148_v2, 0.0004427343 }
 0x3bd   :  { %v147_v36 = vmul.f32 %v345_v62, %v146_v1 }
 0x3c1   :  { %v347_v3 = vpop.eup %346 }
 0x3c2   :  { %v144_v4 = vmul.f32 0.6931472, %v347_v3 }
 0x3c4   :  { %v150_v6 = vsel %vm149_vm10, %v147_v36, %v144_v4 }
 0x3c5   :  { %v151_v7 = vadd.f32 %v150_v6, %v137_v5 }
 0x3c7   :  { %298 = vrot.lane.b32.xlu1 %v151_v7, %s381_s3 }
 0x439   :  { %v299_v8 = vpop.permute.xlu1 %298 }
 0x43a   :  { %v302_v9 = vsel %vm301_vm11, %v294_v52, %v299_v8 }
 0x43b   :  { %v304_v10 = vsel %vm303_vm12, %v302_v9, 0.0 }
 0x43c   :  { %305 = vst [vmem:[#allocation2] sm:$0x3] %v304_v10 }
 0x43d   :  { %316 = dma.vmem_to_hbm [thread:$0]  %s312_s1, 32, %s314_s2, [#allocation3]  }
 0x43e   :  { %372 = dma.done.wait [#allocation3], 32  }
 0x43f   :  { %373 = vsyncadd [#allocation3], 4294967264 }
 0x440   :  { %321 = vsyncpa [#allocation3], 1 }

</bundles_post_ra>
